<compile_context>
chip_gen: v7x
topology: tpu7x:2x2x1
jax: 0.10.0
libtpu: 0.0.40
codegen_flags: <defaults>
</compile_context>

<pallas_src>
import jax
import jax.numpy as jnp
import numpy as np
from jax import lax
from jax.experimental import pallas as pl
from jax.experimental.pallas import tpu as pltpu


def _round_up(x, m):
    return ((x + m - 1) // m) * m


def cconv2d_kernel(p_ref, w_ref, o_ref, acc_ref):
    # (tile_p, tile_k) bf16 @ (tile_k, Np) bf16 -> f32 accumulation on the MXU.
    @pl.when(pl.program_id(1) == 0)
    def _():
        acc_ref[...] = jnp.zeros_like(acc_ref)

    acc_ref[...] += jnp.dot(p_ref[...], w_ref[...],
                            preferred_element_type=jnp.float32)

    @pl.when(pl.program_id(1) == pl.num_programs(1) - 1)
    def _():
        o_ref[...] = acc_ref[...]


def im2col(x2, kh, kw, sh, sw):
    # x2: (N, C2, H, W) -> (N*Ho*Wo, C2*kh*kw); column order (C2, kh, kw) to
    # match PyTorch Conv2d weight (Cout, Cin, kh, kw) flattening.
    N, C2, H, W = x2.shape
    Ho = (H - kh) // sh + 1
    Wo = (W - kw) // sw + 1
    taps = []
    for i in range(kh):
        for j in range(kw):
            taps.append(x2[:, :, i:i + sh * Ho:sh, j:j + sw * Wo:sw])  # (N,C2,Ho,Wo)
    p = jnp.stack(taps, axis=2)              # (N, C2, kh*kw, Ho, Wo)
    p = p.transpose(0, 3, 4, 1, 2)           # (N, Ho, Wo, C2, kh*kw)
    return p.reshape(N * Ho * Wo, C2 * kh * kw), Ho, Wo


def cconv2d_forward(x, w_real, w_imag, b_real, b_imag, stride,
                    padding=(0, 0), tile_p=512, tile_k=512):
    """x: (N, Cin, H, W, 2). Returns (N, Cout, Ho, Wo, 2), matching CConv2d."""
    N, Cin, H, W, _ = x.shape
    Cout, _, kh, kw = w_real.shape
    sh, sw = stride
    ph, pw = padding
    if ph or pw:
        x = jnp.pad(x, ((0, 0), (0, 0), (ph, ph), (pw, pw), (0, 0)))

    # Single im2col over channel-concatenated [real | imag] planes.
    x2 = jnp.concatenate([x[..., 0], x[..., 1]], axis=1)   # (N, 2Cin, H, W)
    pc, Ho, Wo = im2col(x2, kh, kw, sh, sw)                 # (P, 2K)
    P = pc.shape[0]
    K = Cin * kh * kw

    # Padded problem sizes: lane-dense reduction/output dims, 8-aligned rows.
    Kp = _round_up(2 * K + 1, 128)          # +1 row for the folded bias
    Np = _round_up(2 * Cout, 128)
    if P < tile_p:
        tile_p = max(8, _round_up(P, 8))
    P_pad = _round_up(P, tile_p)
    if Kp <= tile_k:
        tile_k = Kp
    else:
        while Kp % tile_k != 0:             # Kp % 128 == 0 -> terminates
            tile_k -= 128

    # Patches: [pr | pi | 1 | 0 ...]  (constant-1 column carries the biases).
    pc = jnp.pad(pc, ((0, P_pad - P), (0, Kp - 2 * K)))
    pc = pc.at[:, 2 * K].set(1.0).astype(jnp.bfloat16)

    # Combined weight: [[wr, wi], [-wi, wr], [br-bi, br+bi]], zero-padded.
    wr = w_real.reshape(Cout, K).T                           # (K, Cout)
    wi = w_imag.reshape(Cout, K).T
    wc = jnp.zeros((Kp, Np), jnp.float32)
    wc = wc.at[:K, :Cout].set(wr)
    wc = wc.at[:K, Cout:2 * Cout].set(wi)
    wc = wc.at[K:2 * K, :Cout].set(-wi)
    wc = wc.at[K:2 * K, Cout:2 * Cout].set(wr)
    wc = wc.at[2 * K, :Cout].set(b_real - b_imag)
    wc = wc.at[2 * K, Cout:2 * Cout].set(b_real + b_imag)
    wc = wc.astype(jnp.bfloat16)

    out = pl.pallas_call(
        cconv2d_kernel,
        out_shape=jax.ShapeDtypeStruct((P_pad, Np), jnp.float32),
        grid_spec=pltpu.PrefetchScalarGridSpec(
            num_scalar_prefetch=0,
            grid=(P_pad // tile_p, Kp // tile_k),
            in_specs=[
                pl.BlockSpec((tile_p, tile_k), lambda i, k: (i, k)),  # patches
                pl.BlockSpec((tile_k, Np), lambda i, k: (k, 0)),      # weights
            ],
            out_specs=pl.BlockSpec((tile_p, Np), lambda i, k: (i, 0)),
            scratch_shapes=[pltpu.VMEM((tile_p, Np), jnp.float32)],
        ),
        compiler_params=pltpu.CompilerParams(
            dimension_semantics=("parallel", "arbitrary")),
    )(pc, wc)

    # (P, 2*Cout) = [real | imag] -> (N, Ho, Wo, 2, Cout) -> (N, Cout, Ho, Wo, 2)
    out = out[:P, :2 * Cout].reshape(N, Ho, Wo, 2, Cout)
    return out.transpose(0, 4, 1, 2, 3)


def reference_forward(x, w_real, w_imag, b_real, b_imag, stride):
    """Plain-JAX (f32) reference matching the PyTorch CConv2d forward."""
    def conv(xp, w, b):
        y = lax.conv_general_dilated(
            xp, w, window_strides=stride, padding="VALID",
            dimension_numbers=("NCHW", "OIHW", "NCHW"))
        return y + b[None, :, None, None]

    x_real, x_im = x[..., 0], x[..., 1]
    c_real = conv(x_real, w_real, b_real) - conv(x_im, w_imag, b_imag)
    c_im = conv(x_real, w_imag, b_imag) + conv(x_im, w_real, b_real)
    return jnp.stack([c_real, c_im], axis=-1)


if __name__ == "__main__":
    # CConv2d config as used in DCU20 (encoder): kernel (7,5), stride (2,2),
    # in_channels=1, out_channels=45; small spatial/batch for the test.
    N, Cin, H, W = 2, 1, 16, 16
    Cout, kh, kw = 45, 7, 5
    stride = (2, 2)

    key = jax.random.PRNGKey(0)
    kx, kwr, kwi, kbr, kbi = jax.random.split(key, 5)

    x = jax.random.normal(kx, (N, Cin, H, W, 2), dtype=jnp.float32)

    # xavier_uniform init for conv weights (matches nn.init.xavier_uniform_)
    fan_in = Cin * kh * kw
    fan_out = Cout * kh * kw
    limit = float(np.sqrt(6.0 / (fan_in + fan_out)))
    w_real = jax.random.uniform(kwr, (Cout, Cin, kh, kw), jnp.float32, -limit, limit)
    w_imag = jax.random.uniform(kwi, (Cout, Cin, kh, kw), jnp.float32, -limit, limit)
    # PyTorch Conv2d default bias init: U(-1/sqrt(fan_in), 1/sqrt(fan_in))
    blim = float(1.0 / np.sqrt(fan_in))
    b_real = jax.random.uniform(kbr, (Cout,), jnp.float32, -blim, blim)
    b_imag = jax.random.uniform(kbi, (Cout,), jnp.float32, -blim, blim)

    out = cconv2d_forward(x, w_real, w_imag, b_real, b_imag, stride)
    out = jax.block_until_ready(out)

    ref = reference_forward(x, w_real, w_imag, b_real, b_imag, stride)
    # bf16 matmul operands (f32 accumulation) -> relaxed tolerance vs f32 ref.
    np.testing.assert_allclose(np.asarray(out), np.asarray(ref),
                               rtol=3e-2, atol=3e-2)

    print("KERNEL_OK")
</pallas_src>

<mosaic_0001>
module attributes {stable_mosaic.version = 11 : i64} {
  func.func @cconv2d_kernel(%arg0: i32, %arg1: i32, %arg2: memref<64x128xbf16, #tpu.memory_space<vmem>>, %arg3: memref<128x128xbf16, #tpu.memory_space<vmem>>, %arg4: memref<64x128xf32, #tpu.memory_space<vmem>>, %arg5: memref<64x128xf32, #tpu.memory_space<vmem>>) attributes {dimension_semantics = [#tpu.dimension_semantics<parallel>, #tpu.dimension_semantics<arbitrary>], iteration_bounds = array<i64: 1, 1>, scalar_prefetch = 0 : i64, scratch_operands = 1 : i64, tpu.core_type = #tpu.core_type<tc>, window_params = [{transform_indices = @transform_0, window_bounds = array<i64: 64, 128>}, {transform_indices = @transform_1, window_bounds = array<i64: 128, 128>}, {transform_indices = @transform_2, window_bounds = array<i64: 64, 128>}]} {
    %c0_i32 = arith.constant 0 : i32
    %0 = arith.cmpi eq, %arg1, %c0_i32 : i32
    %1 = arith.extui %0 : i1 to i32
    %c0_i32_0 = arith.constant 0 : i32
    %2 = arith.cmpi ne, %1, %c0_i32_0 : i32
    scf.if %2 {
      %cst_10 = arith.constant 0.000000e+00 : f32
      %12 = vector.broadcast %cst_10 : f32 to vector<64x128xf32>
      %c0_11 = arith.constant 0 : index
      %c0_12 = arith.constant 0 : index
      %13 = vector.load %arg5[%c0_11, %c0_12] : memref<64x128xf32, #tpu.memory_space<vmem>>, vector<64x128xf32>
      tpu.vector_store %arg5[%c0_11, %c0_12], %12 {strides = array<i32>} : memref<64x128xf32, #tpu.memory_space<vmem>>, vector<64x128xf32>,
    } else {
    }
    %c0 = arith.constant 0 : index
    %c0_1 = arith.constant 0 : index
    %3 = vector.load %arg5[%c0, %c0_1] : memref<64x128xf32, #tpu.memory_space<vmem>>, vector<64x128xf32>
    %c0_2 = arith.constant 0 : index
    %c0_3 = arith.constant 0 : index
    %4 = vector.load %arg2[%c0_2, %c0_3] : memref<64x128xbf16, #tpu.memory_space<vmem>>, vector<64x128xbf16>
    %c0_4 = arith.constant 0 : index
    %c0_5 = arith.constant 0 : index
    %5 = vector.load %arg3[%c0_4, %c0_5] : memref<128x128xbf16, #tpu.memory_space<vmem>>, vector<128x128xbf16>
    %cst = arith.constant dense<0.000000e+00> : vector<64x128xf32>
    %6 = tpu.matmul %4, %5, %cst {dimension_numbers = #tpu.dot_dimension_numbers<[1], [0], [0], [1], [0, 0, 1, 1], [], []>} : vector<64x128xbf16>, vector<128x128xbf16>, vector<64x128xf32> -> vector<64x128xf32>
    %7 = arith.addf %3, %6 : vector<64x128xf32>
    %c0_6 = arith.constant 0 : index
    %c0_7 = arith.constant 0 : index
    %8 = vector.load %arg5[%c0_6, %c0_7] : memref<64x128xf32, #tpu.memory_space<vmem>>, vector<64x128xf32>
    tpu.vector_store %arg5[%c0_6, %c0_7], %7 {strides = array<i32>} : memref<64x128xf32, #tpu.memory_space<vmem>>, vector<64x128xf32>,
    %c0_i32_8 = arith.constant 0 : i32
    %9 = arith.cmpi eq, %arg1, %c0_i32_8 : i32
    %10 = arith.extui %9 : i1 to i32
    %c0_i32_9 = arith.constant 0 : i32
    %11 = arith.cmpi ne, %10, %c0_i32_9 : i32
    scf.if %11 {
      %c0_10 = arith.constant 0 : index
      %c0_11 = arith.constant 0 : index
      %12 = vector.load %arg5[%c0_10, %c0_11] : memref<64x128xf32, #tpu.memory_space<vmem>>, vector<64x128xf32>
      %c0_12 = arith.constant 0 : index
      %c0_13 = arith.constant 0 : index
      %13 = vector.load %arg4[%c0_12, %c0_13] : memref<64x128xf32, #tpu.memory_space<vmem>>, vector<64x128xf32>
      tpu.vector_store %arg4[%c0_12, %c0_13], %12 {strides = array<i32>} : memref<64x128xf32, #tpu.memory_space<vmem>>, vector<64x128xf32>,
    } else {
    }
    return
  }
  func.func @transform_0(%arg0: i32, %arg1: i32) -> (i32, i32) {
    %c0_i32 = arith.constant 0 : i32
    return %arg0, %arg1 : i32, i32
  }
  func.func @transform_1(%arg0: i32, %arg1: i32) -> (i32, i32) {
    %c0_i32 = arith.constant 0 : i32
    %c0_i32_0 = arith.constant 0 : i32
    return %arg1, %c0_i32 : i32, i32
  }
  func.func @transform_2(%arg0: i32, %arg1: i32) -> (i32, i32) {
    %c0_i32 = arith.constant 0 : i32
    %c0_i32_0 = arith.constant 0 : i32
    return %arg0, %c0_i32 : i32, i32
  }
}

</mosaic_0001>

<bundles_post_ra>
// kernel: tpu_custom_call.1
= control target key start
LH: loop header
LB: loop body
LE: loop exit
PB: predicated region body
PF: predicated region fallthrough
CT: control target
= control target key end

     0   :  { %7 = vsyncpa [#allocation4], 0  ;;  %s488_s0 = inlined_call_operand.hbm [shape: bf16[64,128], index: 0, kind: input, shape index: {}]   ;;  %s489_s1 = inlined_call_operand.hbm [shape: bf16[128,128], index: 1, kind: input, shape index: {}]   ;;  %s490_s2 = inlined_call_operand.hbm [shape: f32[64,128], index: 2, kind: output, shape index: {}]  }
   0x1   :  { %8 = vsyncpa [#allocation7], 0 }
   0x2   :  { %9 = vsyncpa [#allocation5], 0  ;;  %s430_s9 = smov [#allocation3]   ;;  %s358_s13 = scalar_lea.hbm %s488_s0, 512 }
   0x3   :  { %s15_s10 = sshll.u32 %s430_s9, 4  ;;  %p359_p0 = scmp.ne.s32.totalorder %s488_s0, %s358_s13  ;;  %s16_s10 = int_to_ptr.vmem [resolvable:$true] %s15_s10 }
   0x4   :  { %p362_p1 = scmp.lt.u32.totalorder %s358_s13, %s488_s0 }
   0x6   :  { %p364_p2 = pnand %p362_p1, %p359_p0 }
   0x8   :  { %367 = shalt.err (!%p364_p2)
}
   0x9   :  { %s368_s18 = scalar_lea.vmem %s16_s10, 512  ;;  %p373_p4 = scmp.lt.s32.totalorder %s16_s10, %s16_s10 }
   0xa   :  { %p369_p3 = scmp.ne.s32.totalorder %s16_s10, %s368_s18  ;;  %p374_p5 = scmp.lt.s32.totalorder %s368_s18, %s368_s18 }
   0xc   :  { %p375_p6 = por %p374_p5, %p373_p4 }
   0xe   :  { %p376_p7 = pnand %p375_p6, %p369_p3 }
  0x10   :  { %379 = shalt.err (!%p376_p7)
}
  0x11   :  { %s431_s19 = smov 64   ;;  %s432_s20 = smov 4  }
  0x12   :  { %21 = dma.hbm_to_vmem [thread:$0]  %s488_s0, 512, %s16_s10, [#allocation4], %s431_s19, %s431_s19, %s432_s20  }
  0x13   :  { %s433_s23 = smov [#allocation6]   ;;  %s380_s27 = scalar_lea.hbm %s489_s1, 1024 }
  0x14   :  { %s27_s24 = sshll.u32 %s433_s23, 4  ;;  %p381_p8 = scmp.ne.s32.totalorder %s489_s1, %s380_s27  ;;  %s28_s24 = int_to_ptr.vmem [resolvable:$true] %s27_s24 }
  0x15   :  { %p384_p9 = scmp.lt.u32.totalorder %s380_s27, %s489_s1 }
  0x17   :  { %p386_p10 = pnand %p384_p9, %p381_p8 }
  0x19   :  { %389 = shalt.err (!%p386_p10)
}
  0x1a   :  { %s390_s4 = scalar_lea.vmem %s28_s24, 1024  ;;  %p395_p12 = scmp.lt.s32.totalorder %s28_s24, %s28_s24 }
  0x1b   :  { %p391_p11 = scmp.ne.s32.totalorder %s28_s24, %s390_s4  ;;  %p396_p13 = scmp.lt.s32.totalorder %s390_s4, %s390_s4 }
  0x1d   :  { %p397_p0 = por %p396_p13, %p395_p12 }
  0x1f   :  { %p398_p1 = pnand %p397_p0, %p391_p11 }
  0x21   :  { %401 = shalt.err (!%p398_p1)
}
  0x22   :  { %33 = dma.hbm_to_vmem [thread:$0]  %s489_s1, 1024, %s28_s24, [#allocation7], %s431_s19, %s431_s19, %s432_s20  }
  0x23   :  { %424 = dma.done.wait [#allocation4], 512  }
  0x24   :  { %425 = vsyncadd [#allocation4], 4294966784 }
  0x25   :  { %426 = dma.done.wait [#allocation7], 1024  }
  0x26   :  { %427 = vsyncadd [#allocation7], 4294966272  ;;  %v346_v0 = vld [vmem:[#allocation6] sm:$0xff]   ;;  %v347_v1 = vld [vmem:[#allocation6 + $0x8] sm:$0xff]   ;;  %s434_s1 = smov [#allocation8]  }
  0x27   :  { %299 = vmatprep.subr.bf16.mxu0 %v346_v0  ;;  %323 = vmatprep.subr.bf16.mxu1 %v346_v0  ;;  %v348_v2 = vld [vmem:[#allocation6 + $0x10] sm:$0xff]   ;;  %v349_v3 = vld [vmem:[#allocation6 + $0x18] sm:$0xff]   ;;  %v354_v4 = vld [vmem:[#allocation3] sm:$0xff]   ;;  %s262_s6 = sshll.u32 %s434_s1, 4  ;;  %s263_s6 = int_to_ptr.vmem [resolvable:$true] %s262_s6 }
  0x28   :  { %300 = vmatpush3.bf16.msra.mxu0 %v346_v0  ;;  %331 = vmatpush3.bf16.msra.mxu1 %v346_v0  ;;  %v355_v5 = vld [vmem:[#allocation3 + $0x10] sm:$0xff]   ;;  %v350_v6 = vld [vmem:[#allocation6 + $0x20] sm:$0xff]   ;;  %v351_v7 = vld [vmem:[#allocation6 + $0x28] sm:$0xff]   ;;  %s402_s7 = scalar_lea.vmem %s263_s6, 1024  ;;  %p407_p3 = scmp.lt.s32.totalorder %s263_s6, %s263_s6 }
  0x29   :  { %301 = vmatprep.subr.bf16.mxu0 %v347_v1  ;;  %324 = vmatprep.subr.bf16.mxu1 %v347_v1  ;;  %v352_v8 = vld [vmem:[#allocation6 + $0x30] sm:$0xff]   ;;  %v353_v9 = vld [vmem:[#allocation6 + $0x38] sm:$0xff]   ;;  %v356_v10 = vld [vmem:[#allocation3 + $0x8] sm:$0xff]   ;;  %p403_p2 = scmp.ne.s32.totalorder %s263_s6, %s402_s7  ;;  %p408_p4 = scmp.lt.s32.totalorder %s402_s7, %s402_s7 }
  0x2a   :  { %315 = vmatprep.mubr.bf16.mxu0 %v354_v4  ;;  %319 = vmatprep.mubr.bf16.mxu1 %v355_v5  ;;  %v357_v11 = vld [vmem:[#allocation3 + $0x18] sm:$0xff]  }
  0x2b   :  { %p409_p5 = por %p408_p4, %p407_p3 }
  0x2c   :  { %302 = vmatpush3.bf16.msra.mxu0 %v347_v1  ;;  %332 = vmatpush3.bf16.msra.mxu1 %v347_v1 }
  0x2d   :  { %303 = vmatprep.subr.bf16.mxu0 %v348_v2  ;;  %325 = vmatprep.subr.bf16.mxu1 %v348_v2  ;;  %p410_p6 = pnand %p409_p5, %p403_p2 }
  0x30   :  { %304 = vmatpush3.bf16.msra.mxu0 %v348_v2  ;;  %333 = vmatpush3.bf16.msra.mxu1 %v348_v2 }
  0x31   :  { %305 = vmatprep.subr.bf16.mxu0 %v349_v3  ;;  %326 = vmatprep.subr.bf16.mxu1 %v349_v3 }
  0x34   :  { %306 = vmatpush3.bf16.msra.mxu0 %v349_v3  ;;  %334 = vmatpush3.bf16.msra.mxu1 %v349_v3 }
  0x35   :  { %307 = vmatprep.subr.bf16.mxu0 %v350_v6  ;;  %327 = vmatprep.subr.bf16.mxu1 %v350_v6 }
  0x38   :  { %308 = vmatpush3.bf16.msra.mxu0 %v350_v6  ;;  %335 = vmatpush3.bf16.msra.mxu1 %v350_v6 }
  0x39   :  { %309 = vmatprep.subr.bf16.mxu0 %v351_v7  ;;  %328 = vmatprep.subr.bf16.mxu1 %v351_v7 }
  0x3c   :  { %310 = vmatpush3.bf16.msra.mxu0 %v351_v7  ;;  %336 = vmatpush3.bf16.msra.mxu1 %v351_v7 }
  0x3d   :  { %311 = vmatprep.subr.bf16.mxu0 %v352_v8  ;;  %329 = vmatprep.subr.bf16.mxu1 %v352_v8 }
  0x40   :  { %312 = vmatpush3.bf16.msra.mxu0 %v352_v8  ;;  %337 = vmatpush3.bf16.msra.mxu1 %v352_v8 }
  0x41   :  { %313 = vmatprep.subr.bf16.mxu0 %v353_v9  ;;  %330 = vmatprep.subr.bf16.mxu1 %v353_v9 }
  0x44   :  { %314 = vmatpush3.bf16.msra.mxu0 %v353_v9  ;;  %338 = vmatpush3.bf16.msra.mxu1 %v353_v9 }
  0x47   :  { %316 = vmatmul.mubr.bf16.vlgmr.msra.gmra.mrb[0].mxu0 %v356_v10  ;;  %320 = vmatmul.mubr.bf16.vlgmr.msra.gmra.mrb[0].mxu1 %v357_v11 }
 0x11a   :  { %v317_v12 = vpop.f32.mrb[0].mxu0  ;;  %v321_v13 = vpop.f32.mrb[0].mxu1 }
 0x11b   :  { %251 = vst [vmem:[#allocation8 + $0x10] sm:$0xff] %v317_v12  ;;  %255 = vst [vmem:[#allocation8 + $0x30] sm:$0xff] %v321_v13  ;;  %v191_v14 = vpop.f32.mrb[1].mxu0  ;;  %v207_v15 = vpop.f32.mrb[1].mxu1 }
 0x11c   :  { %249 = vst [vmem:[#allocation8] sm:$0xff] %v191_v14  ;;  %253 = vst [vmem:[#allocation8 + $0x20] sm:$0xff] %v207_v15  ;;  %v318_v16 = vpop.f32.mrb[2].mxu0  ;;  %v322_v17 = vpop.f32.mrb[2].mxu1 }
 0x11d   :  { %252 = vst [vmem:[#allocation8 + $0x18] sm:$0xff] %v318_v16  ;;  %256 = vst [vmem:[#allocation8 + $0x38] sm:$0xff] %v322_v17  ;;  %v194_v18 = vpop.f32.mrb[3].mxu0  ;;  %v210_v19 = vpop.f32.mrb[3].mxu1 }
 0x11e   :  { %250 = vst [vmem:[#allocation8 + $0x8] sm:$0xff] %v194_v18  ;;  %254 = vst [vmem:[#allocation8 + $0x28] sm:$0xff] %v210_v19 }
 0x11f   :  { %413 = shalt.err (!%p410_p6)
}
 0x120   :  { %s414_s10 = scalar_lea.hbm %s490_s2, 1024 }
 0x121   :  { %p415_p7 = scmp.ne.s32.totalorder %s490_s2, %s414_s10  ;;  %p418_p8 = scmp.lt.u32.totalorder %s414_s10, %s490_s2 }
 0x123   :  { %p420_p9 = pnand %p418_p8, %p415_p7 }
 0x125   :  { %423 = shalt.err (!%p420_p9)
}
 0x126   :  { %s435_s15 = smov 128   ;;  %s436_s16 = smov 8  }
 0x127   :  { %268 = dma.vmem_to_hbm [thread:$0]  %s263_s6, 1024, %s490_s2, [#allocation5], %s435_s15, %s435_s15, %s436_s16  }
 0x128   :  { %428 = dma.done.wait [#allocation5], 1024  }
 0x129   :  { %429 = vsyncadd [#allocation5], 4294966272 }
 0x12a   :  { %272 = vsyncpa [#allocation4], 1 }
 0x12b   :  { %273 = vsyncpa [#allocation7], 1 }
 0x12c   :  { %274 = vsyncpa [#allocation5], 1 }

</bundles_post_ra>
